<compile_context>
chip_gen: v5e
topology: v5e:2x2
jax: 0.10.0
libtpu: 0.0.40
codegen_flags: <defaults>
</compile_context>

<pallas_src>
import functools
import math

import jax
import jax.numpy as jnp
from jax.experimental import pallas as pl
from jax.experimental.pallas import tpu as pltpu

LANE = 128     # lane width (hidden dims are zero-padded to this)
SUBLANE = 8    # f32 sublane granule (action dim / batch tile alignment)


def _round_up(x, m):
    return (x + m - 1) // m * m


def _choose_tile_b(batch):
    """Batch tile: big (amortize ~0.35us/grid step), bounded padding waste,
    >= 2 grid steps for large batches so v7x's two TensorCores both get work,
    lane-multiple so every transposed output block store is lane-dense."""
    if batch <= 1024:
        return _round_up(batch, SUBLANE)
    n_tiles = max(2, pl.cdiv(batch, 2048))
    return _round_up(pl.cdiv(batch, n_tiles), LANE)


def actor_kernel(x_ref, w1_ref, b1_ref, w2_ref, b2_ref, w3_ref, b3_ref, o_ref):
    """Forward pass on one (tile_b, obs) batch tile; whole MLP fits in VMEM.

    o_ref is (ACT_PAD, tile_b): actions on sublanes, batch on lanes, so the
    final store is lane-dense without inflating the output to 128 columns.
    """
    # In-kernel f32 -> bf16 cast for the MXU (free on the VPU).
    x = x_ref[...].astype(jnp.bfloat16)                                 # (tile_b, obs)

    # fc1 + ReLU  (bf16 MXU operands, f32 accumulate / elementwise)
    h1 = jnp.dot(x, w1_ref[...], preferred_element_type=jnp.float32) + b1_ref[...]
    h1 = jnp.maximum(h1, 0.0)                                           # (tile_b, H0P)

    # fc2 + ReLU
    h2 = jnp.dot(h1.astype(jnp.bfloat16), w2_ref[...],
                 preferred_element_type=jnp.float32) + b2_ref[...]
    h2 = jnp.maximum(h2, 0.0)                                           # (tile_b, H1P)

    # fc3 + tanh, computed transposed:  (ACT_PAD, H1P) contracted with (tile_b, H1P)
    h3_t = jax.lax.dot_general(
        w3_ref[...], h2.astype(jnp.bfloat16),
        dimension_numbers=(((1,), (1,)), ((), ())),                     # w3 @ h2^T
        preferred_element_type=jnp.float32)                             # (ACT_PAD, tile_b)
    o_ref[...] = jnp.tanh(h3_t + b3_ref[...]).astype(o_ref.dtype)


@functools.partial(jax.jit, static_argnames=("action_size",))
def actor_forward(x, params, *, action_size):
    """x: (B, observation_size) float32 -> (B, action_size) float32."""
    B, obs = x.shape
    h0p = params["w1t"].shape[1]
    h1p = params["w2t"].shape[1]
    act_pad = params["w3"].shape[0]            # round_up(action_size, 8)

    tile_b = _choose_tile_b(B)
    b_pad = _round_up(B, tile_b)
    if b_pad != B:
        x = jnp.pad(x, ((0, b_pad - B), (0, 0)))
    grid = (b_pad // tile_b,)

    # Tight VMEM budget: double-buffered x/out tiles + resident weights +
    # in-kernel f32/bf16 intermediates + headroom (well under v7x's 64 MiB part).
    w_bytes = sum(int(v.size) * v.dtype.itemsize for v in params.values())
    blk_bytes = 2 * (tile_b * obs * 4 + act_pad * tile_b * 4)
    interm_bytes = 4 * tile_b * max(h0p, h1p) * 4
    vmem_limit = int(min(32 << 20,
                         max(16 << 20, blk_bytes + w_bytes + interm_bytes + (4 << 20))))

    cost = pl.CostEstimate(
        flops=2 * b_pad * (obs * h0p + h0p * h1p + h1p * act_pad),
        transcendentals=b_pad * act_pad,
        bytes_accessed=b_pad * obs * 4 + b_pad * act_pad * 4 + w_bytes,
    )

    const = lambda i: (0, 0)
    out_t = pl.pallas_call(
        actor_kernel,
        out_shape=jax.ShapeDtypeStruct((act_pad, b_pad), jnp.float32),
        grid=grid,
        in_specs=[
            pl.BlockSpec((tile_b, obs), lambda i: (i, 0)),   # x (f32): tiled over batch
            pl.BlockSpec((obs, h0p), const),                 # w1t (VMEM-resident)
            pl.BlockSpec((1, h0p), const),                   # b1
            pl.BlockSpec((h0p, h1p), const),                 # w2t
            pl.BlockSpec((1, h1p), const),                   # b2
            pl.BlockSpec((act_pad, h1p), const),             # w3 (action-major)
            pl.BlockSpec((act_pad, 1), const),               # b3 (column vector)
        ],
        out_specs=pl.BlockSpec((act_pad, tile_b), lambda i: (0, i)),
        compiler_params=pltpu.CompilerParams(
            dimension_semantics=("parallel",),
            vmem_limit_bytes=vmem_limit,
        ),
        cost_estimate=cost,
    )(x, params["w1t"], params["b1"], params["w2t"], params["b2"],
      params["w3"], params["b3"])

    # Contiguous lane slice of the transposed output, then a tiny transpose back
    # to the PyTorch (B, action_size) convention.
    return out_t[:action_size, :B].T


def init_actor_params(key, observation_size, action_size, hidden_units, eps=0.03):
    """Deterministic init mirroring the PyTorch module's __init__.

    fc1/fc2 weights: fanin_init -> U(-1/sqrt(size[0])) on the (out, in) weight.
    fc1/fc2/fc3 biases: PyTorch Linear default U(-1/sqrt(in_features)).
    fc3 weight: U(-eps, eps).
    Hidden dims are zero-padded to 128 (lane-dense vregs, exact under ReLU);
    the fc3 weight/bias are stored action-major and padded to 8 sublanes for the
    transposed (batch-on-lanes) output. Weights in bf16, biases in f32.
    """
    h0, h1 = hidden_units
    k = jax.random.split(key, 6)

    def uniform(kk, shape, bound):
        return jax.random.uniform(kk, shape, jnp.float32, -bound, bound)

    w1 = uniform(k[0], (h0, observation_size), 1.0 / math.sqrt(h0))
    b1 = uniform(k[1], (1, h0), 1.0 / math.sqrt(observation_size))
    w2 = uniform(k[2], (h1, h0), 1.0 / math.sqrt(h1))
    b2 = uniform(k[3], (1, h1), 1.0 / math.sqrt(h0))
    w3 = uniform(k[4], (action_size, h1), eps)
    b3 = uniform(k[5], (action_size,), 1.0 / math.sqrt(h1))

    h0p = _round_up(h0, LANE)
    h1p = _round_up(h1, LANE)
    act_pad = _round_up(action_size, SUBLANE)

    w1t = jnp.zeros((observation_size, h0p), jnp.float32).at[:, :h0].set(w1.T)
    b1p = jnp.zeros((1, h0p), jnp.float32).at[:, :h0].set(b1)
    w2t = jnp.zeros((h0p, h1p), jnp.float32).at[:h0, :h1].set(w2.T)
    b2p = jnp.zeros((1, h1p), jnp.float32).at[:, :h1].set(b2)
    w3p = jnp.zeros((act_pad, h1p), jnp.float32).at[:action_size, :h1].set(w3)
    b3p = jnp.zeros((act_pad, 1), jnp.float32).at[:action_size, 0].set(b3)

    return {
        "w1t": w1t.astype(jnp.bfloat16), "b1": b1p,
        "w2t": w2t.astype(jnp.bfloat16), "b2": b2p,
        "w3": w3p.astype(jnp.bfloat16), "b3": b3p,
    }


def actor_reference(x, params, action_size):
    """Pure-JAX reference with the same bf16 matmul-operand / f32-accumulate scheme."""
    h = jnp.dot(x.astype(jnp.bfloat16), params["w1t"],
                preferred_element_type=jnp.float32) + params["b1"]
    h = jnp.maximum(h, 0.0)
    h = jnp.dot(h.astype(jnp.bfloat16), params["w2t"],
                preferred_element_type=jnp.float32) + params["b2"]
    h = jnp.maximum(h, 0.0)
    h3 = jnp.dot(h.astype(jnp.bfloat16), params["w3"].T,
                 preferred_element_type=jnp.float32) + params["b3"].T
    return jnp.tanh(h3)[:, :action_size]


if __name__ == "__main__":
    observation_size = 16
    action_size = 8
    hidden_units = (32, 32)

    key = jax.random.PRNGKey(0)
    k_params, k_x1, k_x2 = jax.random.split(key, 3)
    params = init_actor_params(k_params, observation_size, action_size, hidden_units)

    # Small-batch check (single grid step, sublane-padded batch tile).
    x_small = jax.random.normal(k_x1, (2, observation_size), jnp.float32)
    out_small = jax.block_until_ready(actor_forward(x_small, params, action_size=action_size))
    ref_small = actor_reference(x_small, params, action_size)
    assert out_small.shape == (2, action_size)
    assert jnp.allclose(out_small, ref_small, atol=1e-3, rtol=1e-3), "small-batch mismatch"

    # Larger, non-aligned batch check (exercises pad/slice path + transposed store).
    x_big = jax.random.normal(k_x2, (1000, observation_size), jnp.float32)
    out_big = jax.block_until_ready(actor_forward(x_big, params, action_size=action_size))
    ref_big = actor_reference(x_big, params, action_size)
    assert out_big.shape == (1000, action_size)
    assert jnp.allclose(out_big, ref_big, atol=1e-3, rtol=1e-3), "large-batch mismatch"

    print("KERNEL_OK")
</pallas_src>

<mosaic_0001>
module attributes {stable_mosaic.version = 11 : i64} {
  func.func @actor_kernel(%arg0: i32, %arg1: memref<8x16xf32, #tpu.memory_space<vmem>>, %arg2: memref<16x128xbf16, #tpu.memory_space<vmem>>, %arg3: memref<1x128xf32, #tpu.memory_space<vmem>>, %arg4: memref<128x128xbf16, #tpu.memory_space<vmem>>, %arg5: memref<1x128xf32, #tpu.memory_space<vmem>>, %arg6: memref<8x128xbf16, #tpu.memory_space<vmem>>, %arg7: memref<8x1xf32, #tpu.memory_space<vmem>>, %arg8: memref<8x8xf32, #tpu.memory_space<vmem>>) attributes {dimension_semantics = [#tpu.dimension_semantics<parallel>], iteration_bounds = array<i64: 1>, scalar_prefetch = 0 : i64, scratch_operands = 0 : i64, tpu.core_type = #tpu.core_type<tc>, window_params = [{transform_indices = @transform_0, window_bounds = array<i64: 8, 16>}, {pipeline_mode = #tpu.pipeline_mode<synchronous>, transform_indices = @transform_1, window_bounds = array<i64: 16, 128>}, {pipeline_mode = #tpu.pipeline_mode<synchronous>, transform_indices = @transform_2, window_bounds = array<i64: 1, 128>}, {pipeline_mode = #tpu.pipeline_mode<synchronous>, transform_indices = @transform_3, window_bounds = array<i64: 128, 128>}, {pipeline_mode = #tpu.pipeline_mode<synchronous>, transform_indices = @transform_4, window_bounds = array<i64: 1, 128>}, {pipeline_mode = #tpu.pipeline_mode<synchronous>, transform_indices = @transform_5, window_bounds = array<i64: 8, 128>}, {pipeline_mode = #tpu.pipeline_mode<synchronous>, transform_indices = @transform_6, window_bounds = array<i64: 8, 1>}, {transform_indices = @transform_7, window_bounds = array<i64: 8, 8>}]} {
    %c0 = arith.constant 0 : index
    %c0_0 = arith.constant 0 : index
    %0 = vector.load %arg1[%c0, %c0_0] : memref<8x16xf32, #tpu.memory_space<vmem>>, vector<8x16xf32>
    %1 = arith.truncf %0 : vector<8x16xf32> to vector<8x16xbf16>
    %c0_1 = arith.constant 0 : index
    %c0_2 = arith.constant 0 : index
    %2 = vector.load %arg2[%c0_1, %c0_2] : memref<16x128xbf16, #tpu.memory_space<vmem>>, vector<16x128xbf16>
    %cst = arith.constant dense<0.000000e+00> : vector<8x128xf32>
    %3 = tpu.matmul %1, %2, %cst {dimension_numbers = #tpu.dot_dimension_numbers<[1], [0], [0], [1], [0, 0, 1, 1], [], []>} : vector<8x16xbf16>, vector<16x128xbf16>, vector<8x128xf32> -> vector<8x128xf32>
    %c0_3 = arith.constant 0 : index
    %c0_4 = arith.constant 0 : index
    %4 = vector.load %arg3[%c0_3, %c0_4] : memref<1x128xf32, #tpu.memory_space<vmem>>, vector<1x128xf32>
    %5 = vector.broadcast %4 : vector<1x128xf32> to vector<8x128xf32>
    %6 = arith.addf %3, %5 : vector<8x128xf32>
    %cst_5 = arith.constant 0.000000e+00 : f32
    %7 = vector.broadcast %cst_5 : f32 to vector<8x128xf32>
    %8 = arith.maximumf %6, %7 : vector<8x128xf32>
    %9 = arith.truncf %8 : vector<8x128xf32> to vector<8x128xbf16>
    %c0_6 = arith.constant 0 : index
    %c0_7 = arith.constant 0 : index
    %10 = vector.load %arg4[%c0_6, %c0_7] : memref<128x128xbf16, #tpu.memory_space<vmem>>, vector<128x128xbf16>
    %cst_8 = arith.constant dense<0.000000e+00> : vector<8x128xf32>
    %11 = tpu.matmul %9, %10, %cst_8 {dimension_numbers = #tpu.dot_dimension_numbers<[1], [0], [0], [1], [0, 0, 1, 1], [], []>} : vector<8x128xbf16>, vector<128x128xbf16>, vector<8x128xf32> -> vector<8x128xf32>
    %c0_9 = arith.constant 0 : index
    %c0_10 = arith.constant 0 : index
    %12 = vector.load %arg5[%c0_9, %c0_10] : memref<1x128xf32, #tpu.memory_space<vmem>>, vector<1x128xf32>
    %13 = vector.broadcast %12 : vector<1x128xf32> to vector<8x128xf32>
    %14 = arith.addf %11, %13 : vector<8x128xf32>
    %cst_11 = arith.constant 0.000000e+00 : f32
    %15 = vector.broadcast %cst_11 : f32 to vector<8x128xf32>
    %16 = arith.maximumf %14, %15 : vector<8x128xf32>
    %c0_12 = arith.constant 0 : index
    %c0_13 = arith.constant 0 : index
    %17 = vector.load %arg6[%c0_12, %c0_13] : memref<8x128xbf16, #tpu.memory_space<vmem>>, vector<8x128xbf16>
    %18 = arith.truncf %16 : vector<8x128xf32> to vector<8x128xbf16>
    %cst_14 = arith.constant dense<0.000000e+00> : vector<8x8xf32>
    %19 = tpu.matmul %17, %18, %cst_14 {dimension_numbers = #tpu.dot_dimension_numbers<[1], [1], [0], [0], [0, 0, 1, 0], [], []>} : vector<8x128xbf16>, vector<8x128xbf16>, vector<8x8xf32> -> vector<8x8xf32>
    %c0_15 = arith.constant 0 : index
    %c0_16 = arith.constant 0 : index
    %20 = vector.load %arg7[%c0_15, %c0_16] : memref<8x1xf32, #tpu.memory_space<vmem>>, vector<8x1xf32>
    %21 = vector.broadcast %20 : vector<8x1xf32> to vector<8x8xf32>
    %22 = arith.addf %19, %21 : vector<8x8xf32>
    %23 = math.tanh %22 : vector<8x8xf32>
    %c0_17 = arith.constant 0 : index
    %c0_18 = arith.constant 0 : index
    %24 = vector.load %arg8[%c0_17, %c0_18] : memref<8x8xf32, #tpu.memory_space<vmem>>, vector<8x8xf32>
    tpu.vector_store %arg8[%c0_17, %c0_18], %23 {strides = array<i32>} : memref<8x8xf32, #tpu.memory_space<vmem>>, vector<8x8xf32>,
    return
  }
  func.func @transform_0(%arg0: i32) -> (i32, i32) {
    %c0_i32 = arith.constant 0 : i32
    %c0_i32_0 = arith.constant 0 : i32
    return %arg0, %c0_i32 : i32, i32
  }
  func.func @transform_1(%arg0: i32) -> (i32, i32) {
    %c0_i32 = arith.constant 0 : i32
    %c0_i32_0 = arith.constant 0 : i32
    %c0_i32_1 = arith.constant 0 : i32
    return %c0_i32, %c0_i32_0 : i32, i32
  }
  func.func @transform_2(%arg0: i32) -> (i32, i32) {
    %c0_i32 = arith.constant 0 : i32
    %c0_i32_0 = arith.constant 0 : i32
    %c0_i32_1 = arith.constant 0 : i32
    return %c0_i32, %c0_i32_0 : i32, i32
  }
  func.func @transform_3(%arg0: i32) -> (i32, i32) {
    %c0_i32 = arith.constant 0 : i32
    %c0_i32_0 = arith.constant 0 : i32
    %c0_i32_1 = arith.constant 0 : i32
    return %c0_i32, %c0_i32_0 : i32, i32
  }
  func.func @transform_4(%arg0: i32) -> (i32, i32) {
    %c0_i32 = arith.constant 0 : i32
    %c0_i32_0 = arith.constant 0 : i32
    %c0_i32_1 = arith.constant 0 : i32
    return %c0_i32, %c0_i32_0 : i32, i32
  }
  func.func @transform_5(%arg0: i32) -> (i32, i32) {
    %c0_i32 = arith.constant 0 : i32
    %c0_i32_0 = arith.constant 0 : i32
    %c0_i32_1 = arith.constant 0 : i32
    return %c0_i32, %c0_i32_0 : i32, i32
  }
  func.func @transform_6(%arg0: i32) -> (i32, i32) {
    %c0_i32 = arith.constant 0 : i32
    %c0_i32_0 = arith.constant 0 : i32
    %c0_i32_1 = arith.constant 0 : i32
    return %c0_i32, %c0_i32_0 : i32, i32
  }
  func.func @transform_7(%arg0: i32) -> (i32, i32) {
    %c0_i32 = arith.constant 0 : i32
    %c0_i32_0 = arith.constant 0 : i32
    return %c0_i32, %arg0 : i32, i32
  }
}

</mosaic_0001>

<bundles_post_ra>
// kernel: actor_forward.1
= control target key start
LH: loop header
LB: loop body
LE: loop exit
PB: predicated region body
PF: predicated region fallthrough
CT: control target
= control target key end

     0   :  { %12 = vsyncpa [#allocation3], 0  ;;  %s268_s27 = smov [#allocation2]   ;;  %s269_s29 = smov 64   ;;  %s336_s0 = inlined_call_operand.vmem [shape: f32[8,16], index: 0, kind: input, shape index: {}]   ;;  %s337_s1 = inlined_call_operand.vmem [shape: bf16[16,128], index: 1, kind: input, shape index: {}]   ;;  %s338_s2 = inlined_call_operand.vmem [shape: f32[1,128], index: 2, kind: input, shape index: {}]   ;;  %s339_s3 = inlined_call_operand.hbm [shape: bf16[128,128], index: 3, kind: input, shape index: {}]   ;;  %s340_s4 = inlined_call_operand.vmem [shape: f32[1,128], index: 4, kind: input, shape index: {}]   ;;  %s341_s5 = inlined_call_operand.vmem [shape: bf16[8,128], index: 5, kind: input, shape index: {}]   ;;  %s342_s6 = inlined_call_operand.vmem [shape: f32[8,1], index: 6, kind: input, shape index: {}]   ;;  %s343_s7 = inlined_call_operand.vmem [shape: f32[8,8], index: 7, kind: output, shape index: {}]  }
   0x1   :  { %s23_s26 = sshll.u32 %s339_s3, 4  ;;  %s25_s28 = sshll.u32 %s268_s27, 4  ;;  %s24_s26 = int_to_ptr.hbm [resolvable:$true] %s23_s26  ;;  %s26_s28 = int_to_ptr.vmem [resolvable:$true] %s25_s28 }
   0x2   :  { %s270_s30 = smov 4  }
   0x3   :  { %31 = dma.hbm_to_vmem [thread:$0]  %s24_s26, 1024, %s26_s28, [#allocation3], %s269_s29, %s269_s29, %s270_s30  }
   0x4   :  { %266 = dma.done.wait [#allocation3], 1024  }
   0x5   :  { %267 = vsyncadd [#allocation3], 4294966272  ;;  %v224_v0 = vld [vmem:[%s337_s1] sm:$0xff]  ;;  %v232_v2 = vld [vmem:[#allocation2 + $0x38] sm:$0xff]  ;;  %vm57_vm0 = vcmask 130048   ;;  %v271_v18 = vmov 0  }
   0x6   :  { %v43_v1 = vld [vmem:[%s336_s0] sm:$0xff]  ;;  %68 = vmatpush.bf16.msra.mxu0 %v224_v0  ;;  %144 = vmatpush.bf16.msra.mxu1 %v232_v2  ;;  %v231_v4 = vld [vmem:[#allocation2 + $0x30] sm:$0xff]  ;;  %v230_v5 = vld [vmem:[#allocation2 + $0x28] sm:$0xff]  ;;  %vm180_vm1 = vcmask 64512  }
   0x7   :  { %v44_v3 = vpack.c.bf16 %v43_v1, %v43_v1  ;;  %v229_v6 = vld [vmem:[#allocation2 + $0x20] sm:$0xff]  ;;  %v228_v7 = vld [vmem:[#allocation2 + $0x18] sm:$0xff]  ;;  %v227_v8 = vld [vmem:[#allocation2 + $0x10] sm:$0xff]  ;;  %237 = vset.pattern.permute.xlu0 %v271_v18 }
   0x8   :  { %v226_v9 = vld [vmem:[#allocation2 + $0x8] sm:$0xff]  ;;  %v225_v10 = vld [vmem:[#allocation2] sm:$0xff] }
   0x9   :  { %191 = vmatmul.msk.bf16.vlgmr.msra.gmra.mxu0 %vm57_vm0, %v44_v3  ;;  %v238_v11 = vld [vmem:[%s338_s2] ss:$0 sm:$0xff] }
   0xa   :  { %145 = vmatpush.bf16.msra.mxu1 %v231_v4  ;;  %v160_v17 = vld [vmem:[%s342_s6] sm:$0xff] }
   0xb   :  { %163 = vperm.xlu0 %237, %v160_v17   ;;  %v239_v19 = vld [vmem:[%s340_s4] ss:$0 sm:$0xff] }
   0xc   :  { %v158_v25 = vld [vmem:[%s341_s5] sm:$0xf] }
   0xe   :  { %146 = vmatpush.bf16.msra.mxu1 %v230_v5 }
  0x12   :  { %147 = vmatpush.bf16.msra.mxu1 %v229_v6 }
  0x16   :  { %148 = vmatpush.bf16.msra.mxu1 %v228_v7 }
  0x1a   :  { %149 = vmatpush.bf16.msra.mxu1 %v227_v8 }
  0x1e   :  { %150 = vmatpush.bf16.msra.mxu1 %v226_v9 }
  0x22   :  { %151 = vmatpush.bf16.msra.mxu1 %v225_v10 }
  0x7d   :  { %v164_v26 = vpop.permute.xlu0 %163 }
  0x86   :  { %v70_v12 = vpop.f32.mrf.mxu0 }
  0x87   :  { %v71_v13 = vadd.f32 %v238_v11, %v70_v12 }
  0x89   :  { %v74_v14 = vmax.f32 %v71_v13, 0.0 }
  0x8b   :  { %v75_v15 = vpack.c.bf16 %v74_v14, %v74_v14 }
  0x8d   :  { %152 = vmatmul.bf16.vlgmr.msra.gmra.mxu1 %v75_v15 }
  0x8e   :  { %v72_v16 = vpop.f32.mrf.mxu0 }
 0x10a   :  { %v153_v20 = vpop.f32.mrf.mxu1 }
 0x10b   :  { %v154_v21 = vadd.f32 %v239_v19, %v153_v20 }
 0x10d   :  { %v157_v22 = vmax.f32 %v154_v21, 0.0 }
 0x10f   :  { %v159_v23 = vpack.c.bf16 %v157_v22, %v157_v22 }
 0x111   :  { %173 = vmatpush.bf16.xpose.msra.mxu2 %v159_v23 }
 0x112   :  { %v155_v24 = vpop.f32.mrf.mxu1 }
 0x118   :  { %174 = vmatmul.bf16.vlgmr.msra.gmra.mxu2 %v158_v25 }
 0x19b   :  { %v175_v27 = vpop.f32.mrf.mxu2 }
 0x19c   :  { %v176_v28 = vadd.f32 %v175_v27, %v164_v26 }
 0x19e   :  { %240 = vtanh.f32 %v176_v28 }
 0x1a3   :  { %v177_v29 = vpop.f32.mrf.mxu2 }
 0x1a4   :  { %v241_v30 = vpop.eup %240 }
 0x1a5   :  { %181 = vst.msk [vmem:[%s343_s7] sm:$0xff] %vm180_vm1, %v241_v30 }
 0x1a6   :  { %186 = vsyncpa [#allocation3], 1 }

</bundles_post_ra>
